<compile_context>
chip_gen: v6e
topology: v6e:2x2x1
jax: 0.10.0
libtpu: 0.0.40
codegen_flags: <defaults>
</compile_context>

<pallas_src>
import jax
import jax.numpy as jnp
from jax import lax
from jax.experimental import pallas as pl
from jax.experimental.pallas import tpu as pltpu


LN_EPS = 1e-5


def _decoder_kernel(x_ref, gamma_ref, beta_ref, w_ref, b_ref, o_ref):
    # x_ref: (Tm, E), gamma/beta: (1, E), w: (E, Tn), b: (1, Tn), o: (Tm, Tn)
    x = x_ref[...]
    xf = x.astype(jnp.float32)                    # trace-time no-op if already f32
    inv_e = 1.0 / float(x_ref.shape[-1])

    # Single-pass LayerNorm statistics (two lane reductions -> XLU; the x*x
    # elementwise pass replaces the centered**2 pass of the two-pass formula).
    s = jnp.sum(xf, axis=-1, keepdims=True)
    sq = jnp.sum(xf * xf, axis=-1, keepdims=True)
    mean = s * inv_e
    var = sq * inv_e - mean * mean
    inv_std = lax.rsqrt(var + LN_EPS)             # EUP

    gamma = gamma_ref[...].astype(jnp.float32)    # no-op casts when params are f32
    beta = beta_ref[...].astype(jnp.float32)
    h = (xf - mean) * inv_std * gamma + beta

    # Feed the MXU in the weight's dtype (bf16 weight -> bf16 matmul, f32 acc);
    # never upcast the (E, Tn) weight tile.
    w = w_ref[...]
    out = jnp.dot(h.astype(w.dtype), w, preferred_element_type=jnp.float32)
    out = out + b_ref[...].astype(jnp.float32)
    o_ref[...] = out.astype(o_ref.dtype)


def _round_up(x, m):
    return ((x + m - 1) // m) * m


def decoder_linear_norm(embedding, gamma, beta, weight, bias,
                        *, tile_rows=512, tile_out=512):
    """embedding: (B, S, E); weight: (O, E) [PyTorch layout]; bias: (O,)."""
    B, S, E = embedding.shape
    O = weight.shape[0]
    N = B * S
    out_dtype = embedding.dtype

    # ---- tile sizes (sublane mult-of-8 rows, lane mult-of-128 output) ------
    tm = min(tile_rows, _round_up(N, 8))          # row tile
    n_pad = _round_up(N, tm)

    o_lane = _round_up(O, 128)                    # lane-dense output width
    tn = min(tile_out, o_lane)                    # output tile
    o_pad = _round_up(o_lane, tn)

    # ---- pad / reshape operands in the wrapper -----------------------------
    x2d = embedding.reshape(N, E)
    if n_pad != N:
        x2d = jnp.pad(x2d, ((0, n_pad - N), (0, 0)))
    gamma2d = gamma.reshape(1, E)
    beta2d = beta.reshape(1, E)
    w_t = weight.T                                # (E, O): kernel does h @ w_t
    bias_p = bias
    if o_pad != O:
        w_t = jnp.pad(w_t, ((0, 0), (0, o_pad - O)))
        bias_p = jnp.pad(bias, (0, o_pad - O))
    bias2d = bias_p.reshape(1, o_pad)

    # Rows are the inner (fastest) grid axis -> the weight tile's block index
    # is constant across it and is not re-DMA'd between row steps.
    grid = (o_pad // tn, n_pad // tm)

    out2d = pl.pallas_call(
        _decoder_kernel,
        out_shape=jax.ShapeDtypeStruct((n_pad, o_pad), out_dtype),
        grid_spec=pltpu.PrefetchScalarGridSpec(
            num_scalar_prefetch=0,
            grid=grid,
            in_specs=[
                pl.BlockSpec((tm, E), lambda j, i: (i, 0)),   # x rows
                pl.BlockSpec((1, E),  lambda j, i: (0, 0)),   # gamma
                pl.BlockSpec((1, E),  lambda j, i: (0, 0)),   # beta
                pl.BlockSpec((E, tn), lambda j, i: (0, j)),   # weight^T tile
                pl.BlockSpec((1, tn), lambda j, i: (0, j)),   # bias tile
            ],
            out_specs=pl.BlockSpec((tm, tn), lambda j, i: (i, j)),
        ),
        compiler_params=pltpu.CompilerParams(
            dimension_semantics=("parallel", "parallel"),
            vmem_limit_bytes=64 * 1024 * 1024,    # <= physical on v5e/v6e/v7x
        ),
    )(x2d, gamma2d, beta2d, w_t, bias2d)

    return out2d[:N, :O].reshape(B, S, O)


def _reference(embedding, gamma, beta, weight, bias):
    x = embedding.astype(jnp.float32)
    mean = jnp.mean(x, axis=-1, keepdims=True)
    var = jnp.mean((x - mean) ** 2, axis=-1, keepdims=True)
    h = (x - mean) * lax.rsqrt(var + LN_EPS)
    h = h * gamma + beta
    return h @ weight.T.astype(jnp.float32) + bias


if __name__ == "__main__":
    # Small deterministic example: batch=2, seq=8, embedding_dim=32, output_dim=2
    B, S, E, O = 2, 8, 32, 2
    key = jax.random.PRNGKey(0)
    k_x, k_w, k_b = jax.random.split(key, 3)

    embedding = jax.random.normal(k_x, (B, S, E), dtype=jnp.float32)

    # LayerNorm params (PyTorch default init: gamma=1, beta=0)
    gamma = jnp.ones((E,), dtype=jnp.float32)
    beta = jnp.zeros((E,), dtype=jnp.float32)

    # Linear params (PyTorch default init: U(-1/sqrt(E), 1/sqrt(E)))
    bound = 1.0 / (E ** 0.5)
    weight = jax.random.uniform(k_w, (O, E), minval=-bound, maxval=bound,
                                dtype=jnp.float32)
    bias = jax.random.uniform(k_b, (O,), minval=-bound, maxval=bound,
                              dtype=jnp.float32)

    out = decoder_linear_norm(embedding, gamma, beta, weight, bias)
    out = jax.block_until_ready(out)

    ref = _reference(embedding, gamma, beta, weight, bias)
    assert out.shape == (B, S, O)
    assert jnp.allclose(out, ref, atol=1e-5, rtol=1e-5), "mismatch vs reference"

    print("KERNEL_OK")
</pallas_src>

<mosaic_0001>
module attributes {stable_mosaic.version = 11 : i64} {
  func.func @_decoder_kernel(%arg0: i32, %arg1: i32, %arg2: memref<16x32xf32, #tpu.memory_space<vmem>>, %arg3: memref<1x32xf32, #tpu.memory_space<vmem>>, %arg4: memref<1x32xf32, #tpu.memory_space<vmem>>, %arg5: memref<32x128xf32, #tpu.memory_space<vmem>>, %arg6: memref<1x128xf32, #tpu.memory_space<vmem>>, %arg7: memref<16x128xf32, #tpu.memory_space<vmem>>) attributes {dimension_semantics = [#tpu.dimension_semantics<parallel>, #tpu.dimension_semantics<parallel>], iteration_bounds = array<i64: 1, 1>, scalar_prefetch = 0 : i64, scratch_operands = 0 : i64, tpu.core_type = #tpu.core_type<tc>, window_params = [{transform_indices = @transform_0, window_bounds = array<i64: 16, 32>}, {pipeline_mode = #tpu.pipeline_mode<synchronous>, transform_indices = @transform_1, window_bounds = array<i64: 1, 32>}, {pipeline_mode = #tpu.pipeline_mode<synchronous>, transform_indices = @transform_2, window_bounds = array<i64: 1, 32>}, {transform_indices = @transform_3, window_bounds = array<i64: 32, 128>}, {transform_indices = @transform_4, window_bounds = array<i64: 1, 128>}, {transform_indices = @transform_5, window_bounds = array<i64: 16, 128>}]} {
    %c0 = arith.constant 0 : index
    %c0_0 = arith.constant 0 : index
    %0 = vector.load %arg2[%c0, %c0_0] : memref<16x32xf32, #tpu.memory_space<vmem>>, vector<16x32xf32>
    %cst = arith.constant dense<0.000000e+00> : vector<16xf32>
    %1 = vector.multi_reduction <add>, %0, %cst [1] : vector<16x32xf32> to vector<16xf32>
    %2 = vector.shape_cast %1 : vector<16xf32> to vector<16x1xf32>
    %3 = arith.mulf %0, %0 : vector<16x32xf32>
    %cst_1 = arith.constant dense<0.000000e+00> : vector<16xf32>
    %4 = vector.multi_reduction <add>, %3, %cst_1 [1] : vector<16x32xf32> to vector<16xf32>
    %5 = vector.shape_cast %4 : vector<16xf32> to vector<16x1xf32>
    %cst_2 = arith.constant 3.125000e-02 : f32
    %6 = vector.broadcast %cst_2 : f32 to vector<16x1xf32>
    %7 = arith.mulf %2, %6 : vector<16x1xf32>
    %cst_3 = arith.constant 3.125000e-02 : f32
    %8 = vector.broadcast %cst_3 : f32 to vector<16x1xf32>
    %9 = arith.mulf %5, %8 : vector<16x1xf32>
    %10 = arith.mulf %7, %7 : vector<16x1xf32>
    %11 = arith.subf %9, %10 : vector<16x1xf32>
    %cst_4 = arith.constant 9.99999974E-6 : f32
    %12 = vector.broadcast %cst_4 : f32 to vector<16x1xf32>
    %13 = arith.addf %11, %12 : vector<16x1xf32>
    %14 = math.rsqrt %13 : vector<16x1xf32>
    %c0_5 = arith.constant 0 : index
    %c0_6 = arith.constant 0 : index
    %15 = vector.load %arg3[%c0_5, %c0_6] : memref<1x32xf32, #tpu.memory_space<vmem>>, vector<1x32xf32>
    %c0_7 = arith.constant 0 : index
    %c0_8 = arith.constant 0 : index
    %16 = vector.load %arg4[%c0_7, %c0_8] : memref<1x32xf32, #tpu.memory_space<vmem>>, vector<1x32xf32>
    %17 = vector.broadcast %7 : vector<16x1xf32> to vector<16x32xf32>
    %18 = arith.subf %0, %17 : vector<16x32xf32>
    %19 = vector.broadcast %14 : vector<16x1xf32> to vector<16x32xf32>
    %20 = arith.mulf %18, %19 : vector<16x32xf32>
    %21 = vector.broadcast %15 : vector<1x32xf32> to vector<16x32xf32>
    %22 = arith.mulf %20, %21 : vector<16x32xf32>
    %23 = vector.broadcast %16 : vector<1x32xf32> to vector<16x32xf32>
    %24 = arith.addf %22, %23 : vector<16x32xf32>
    %c0_9 = arith.constant 0 : index
    %c0_10 = arith.constant 0 : index
    %25 = vector.load %arg5[%c0_9, %c0_10] : memref<32x128xf32, #tpu.memory_space<vmem>>, vector<32x128xf32>
    %cst_11 = arith.constant dense<0.000000e+00> : vector<16x128xf32>
    %26 = tpu.matmul %24, %25, %cst_11 {dimension_numbers = #tpu.dot_dimension_numbers<[1], [0], [0], [1], [0, 0, 1, 1], [], []>} : vector<16x32xf32>, vector<32x128xf32>, vector<16x128xf32> -> vector<16x128xf32>
    %c0_12 = arith.constant 0 : index
    %c0_13 = arith.constant 0 : index
    %27 = vector.load %arg6[%c0_12, %c0_13] : memref<1x128xf32, #tpu.memory_space<vmem>>, vector<1x128xf32>
    %28 = vector.broadcast %27 : vector<1x128xf32> to vector<16x128xf32>
    %29 = arith.addf %26, %28 : vector<16x128xf32>
    %c0_14 = arith.constant 0 : index
    %c0_15 = arith.constant 0 : index
    %30 = vector.load %arg7[%c0_14, %c0_15] : memref<16x128xf32, #tpu.memory_space<vmem>>, vector<16x128xf32>
    tpu.vector_store %arg7[%c0_14, %c0_15], %29 {strides = array<i32>} : memref<16x128xf32, #tpu.memory_space<vmem>>, vector<16x128xf32>,
    return
  }
  func.func @transform_0(%arg0: i32, %arg1: i32) -> (i32, i32) {
    %c0_i32 = arith.constant 0 : i32
    %c0_i32_0 = arith.constant 0 : i32
    return %arg1, %c0_i32 : i32, i32
  }
  func.func @transform_1(%arg0: i32, %arg1: i32) -> (i32, i32) {
    %c0_i32 = arith.constant 0 : i32
    %c0_i32_0 = arith.constant 0 : i32
    %c0_i32_1 = arith.constant 0 : i32
    return %c0_i32, %c0_i32_0 : i32, i32
  }
  func.func @transform_2(%arg0: i32, %arg1: i32) -> (i32, i32) {
    %c0_i32 = arith.constant 0 : i32
    %c0_i32_0 = arith.constant 0 : i32
    %c0_i32_1 = arith.constant 0 : i32
    return %c0_i32, %c0_i32_0 : i32, i32
  }
  func.func @transform_3(%arg0: i32, %arg1: i32) -> (i32, i32) {
    %c0_i32 = arith.constant 0 : i32
    %c0_i32_0 = arith.constant 0 : i32
    return %c0_i32, %arg0 : i32, i32
  }
  func.func @transform_4(%arg0: i32, %arg1: i32) -> (i32, i32) {
    %c0_i32 = arith.constant 0 : i32
    %c0_i32_0 = arith.constant 0 : i32
    return %c0_i32, %arg0 : i32, i32
  }
  func.func @transform_5(%arg0: i32, %arg1: i32) -> (i32, i32) {
    %c0_i32 = arith.constant 0 : i32
    return %arg1, %arg0 : i32, i32
  }
}

</mosaic_0001>

<bundles_post_ra>
// kernel: tpu_custom_call.1
= control target key start
LH: loop header
LB: loop body
LE: loop exit
PB: predicated region body
PF: predicated region fallthrough
CT: control target
= control target key end

     0   :  { %10 = vsyncpa [#allocation3], 0  ;;  %s377_s0 = inlined_call_operand.hbm [shape: f32[16,32], index: 0, kind: input, shape index: {}]   ;;  %s378_s1 = inlined_call_operand.vmem [shape: f32[1,32], index: 1, kind: input, shape index: {}]   ;;  %s379_s2 = inlined_call_operand.vmem [shape: f32[1,32], index: 2, kind: input, shape index: {}]   ;;  %s380_s3 = inlined_call_operand.hbm [shape: f32[32,128], index: 3, kind: input, shape index: {}]   ;;  %s381_s4 = inlined_call_operand.vmem [shape: f32[1,128], index: 4, kind: input, shape index: {}]   ;;  %s382_s5 = inlined_call_operand.hbm [shape: f32[16,128], index: 5, kind: output, shape index: {}]  }
   0x1   :  { %11 = vsyncpa [#allocation6], 0 }
   0x2   :  { %12 = vsyncpa [#allocation4], 0  ;;  %s309_s18 = smov [#allocation2]  }
   0x3   :  { %s18_s19 = sshll.u32 %s309_s18, 4  ;;  %s19_s19 = int_to_ptr.vmem [resolvable:$true] %s18_s19 }
   0x4   :  { %s251_s20 = scalar_lea.vmem %s19_s19, 256  ;;  %p256_p1 = scmp.lt.s32.totalorder %s19_s19, %s19_s19 }
   0x5   :  { %p252_p0 = scmp.ne.s32.totalorder %s19_s19, %s251_s20  ;;  %p257_p2 = scmp.lt.s32.totalorder %s251_s20, %s251_s20 }
   0x7   :  { %p258_p3 = por %p257_p2, %p256_p1 }
   0x9   :  { %p259_p4 = pnand %p258_p3, %p252_p0 }
   0xb   :  { %262 = shalt.err (!%p259_p4)
}
   0xc   :  { %s310_s21 = smov 128   ;;  %s311_s22 = smov 8  }
   0xd   :  { %24 = dma.hbm_to_vmem [thread:$0]  %s377_s0, 256, %s19_s19, [#allocation3], %s310_s21, %s310_s21, %s311_s22  }
   0xe   :  { %s312_s25 = smov [#allocation5]  }
   0xf   :  { %s34_s26 = sshll.u32 %s312_s25, 4  ;;  %s35_s26 = int_to_ptr.vmem [resolvable:$true] %s34_s26 }
  0x10   :  { %s271_s27 = scalar_lea.vmem %s35_s26, 512  ;;  %p276_p6 = scmp.lt.s32.totalorder %s35_s26, %s35_s26 }
  0x11   :  { %p272_p5 = scmp.ne.s32.totalorder %s35_s26, %s271_s27  ;;  %p277_p7 = scmp.lt.s32.totalorder %s271_s27, %s271_s27 }
  0x13   :  { %p278_p8 = por %p277_p7, %p276_p6 }
  0x15   :  { %p279_p9 = pnand %p278_p8, %p272_p5 }
  0x17   :  { %282 = shalt.err (!%p279_p9)
}
  0x18   :  { %40 = dma.hbm_to_vmem [thread:$0]  %s380_s3, 512, %s35_s26, [#allocation6], %s310_s21, %s310_s21, %s311_s22  }
  0x19   :  { %303 = dma.done.wait [#allocation3], 256  }
  0x1a   :  { %304 = vsyncadd [#allocation3], 4294967040 }
  0x1b   :  { %305 = dma.done.wait [#allocation6], 512  }
  0x1c   :  { %306 = vsyncadd [#allocation6], 4294966784  ;;  %vm51_vm0 = vcmask 261120   ;;  %v49_v0 = vld [vmem:[#allocation2] sm:$0xff]  ;;  %v50_v1 = vld [vmem:[#allocation2 + $0x8] sm:$0xff] }
  0x1d   :  { %v52_v2 = vsel %vm51_vm0, %v49_v0, 0.0  ;;  %v58_v3 = vmul.f32 %v49_v0, %v49_v0  ;;  %v59_v4 = vmul.f32 %v50_v1, %v50_v1  ;;  %v55_v6 = vsel %vm51_vm0, %v50_v1, 0.0  ;;  %v103_v8 = vld [vmem:[#allocation5 + $0x18] sm:$0xff]  ;;  %v102_v9 = vld [vmem:[#allocation5 + $0x10] sm:$0xff]  ;;  %v101_v10 = vld [vmem:[#allocation5 + $0x8] sm:$0xff] }
  0x1e   :  { %53 = vadd.xlane.f32.xlu0 %v52_v2  ;;  %223 = vmatprep.subr.mxu0 %v103_v8  ;;  %v100_v11 = vld [vmem:[#allocation5] sm:$0xff]  ;;  %v212_v28 = vld [vmem:[%s378_s1] ss:$0 sm:$0xff]  ;;  %s313_s1 = smov [#allocation7]  }
  0x1f   :  { %v60_v5 = vsel %vm51_vm0, %v58_v3, 0.0  ;;  %v63_v7 = vsel %vm51_vm0, %v59_v4, 0.0  ;;  %224 = vmatpush3.msra.mxu0 %v103_v8  ;;  %v213_v30 = vld [vmem:[%s379_s2] ss:$0 sm:$0xff]  ;;  %s199_s9 = sshll.u32 %s313_s1, 4  ;;  %s200_s9 = int_to_ptr.vmem [resolvable:$true] %s199_s9 }
  0x20   :  { %61 = vadd.xlane.f32.xlu1 %v60_v5  ;;  %225 = vmatprep.subr.mxu0 %v102_v9  ;;  %v214_v38 = vld [vmem:[%s381_s4] ss:$0 sm:$0xff]  ;;  %s283_s2 = scalar_lea.vmem %s200_s9, 256  ;;  %p288_p11 = scmp.lt.s32.totalorder %s200_s9, %s200_s9 }
  0x21   :  { %226 = vmatpush3.msra.mxu0 %v102_v9  ;;  %p284_p10 = scmp.ne.s32.totalorder %s200_s9, %s283_s2  ;;  %p289_p12 = scmp.lt.s32.totalorder %s283_s2, %s283_s2 }
  0x22   :  { %56 = vadd.xlane.f32.xlu0 %v55_v6  ;;  %227 = vmatprep.subr.mxu0 %v101_v10 }
  0x23   :  { %228 = vmatpush3.msra.mxu0 %v101_v10  ;;  %p290_p13 = por %p289_p12, %p288_p11 }
  0x24   :  { %64 = vadd.xlane.f32.xlu1 %v63_v7  ;;  %229 = vmatprep.subr.mxu0 %v100_v11 }
  0x25   :  { %230 = vmatpush3.msra.mxu0 %v100_v11  ;;  %p291_p0 = pnand %p290_p13, %p284_p10 }
  0xa7   :  { %v54_v12 = vpop.xlane.xlu0 %53 }
  0xa8   :  { %v66_v13 = vmul.f32 0.03125, %v54_v12 }
  0xa9   :  { %v62_v14 = vpop.xlane.xlu1 %61 }
  0xaa   :  { %v70_v15 = vmul.f32 %v66_v13, %v66_v13  ;;  %v68_v16 = vmul.f32 0.03125, %v62_v14  ;;  %v80_v26 = vsub.f32 %v49_v0, %v66_v13 }
  0xab   :  { %v57_v17 = vpop.xlane.xlu0 %56 }
  0xac   :  { %v72_v18 = vsub.f32 %v68_v16, %v70_v15  ;;  %v67_v19 = vmul.f32 0.03125, %v57_v17 }
  0xad   :  { %v65_v20 = vpop.xlane.xlu1 %64 }
  0xae   :  { %v74_v21 = vadd.f32 1e-05, %v72_v18  ;;  %v71_v22 = vmul.f32 %v67_v19, %v67_v19  ;;  %v69_v23 = vmul.f32 0.03125, %v65_v20  ;;  %v81_v31 = vsub.f32 %v50_v1, %v67_v19 }
  0xb0   :  { %239 = vrsqrt.f32 %v74_v21  ;;  %v73_v24 = vsub.f32 %v69_v23, %v71_v22 }
  0xb2   :  { %v75_v25 = vadd.f32 1e-05, %v73_v24 }
  0xb4   :  { %241 = vrsqrt.f32 %v75_v25 }
  0xbd   :  { %v240_v27 = vpop.eup %239 }
  0xbe   :  { %v82_v29 = vmul.f32 %v240_v27, %v80_v26 }
  0xc0   :  { %v90_v32 = vmul.f32 %v212_v28, %v82_v29 }
  0xc1   :  { %v242_v33 = vpop.eup %241 }
  0xc2   :  { %v83_v34 = vmul.f32 %v242_v33, %v81_v31  ;;  %v98_v35 = vadd.f32 %v213_v30, %v90_v32 }
  0xc4   :  { %v91_v36 = vmul.f32 %v212_v28, %v83_v34  ;;  %231 = vmatprep.mubr.msk.f32.mxu0 %vm51_vm0, %v98_v35 }
  0xc6   :  { %v99_v37 = vadd.f32 %v213_v30, %v91_v36 }
  0xc8   :  { %232 = vmatmul.mubr.msk.f32.vlgmr.msra.gmra.mxu0 %vm51_vm0, %v99_v37 }
 0x188   :  { %v233_v39 = vpop.f32.mrf.mxu0 }
 0x189   :  { %v189_v40 = vadd.f32 %v233_v39, %v214_v38 }
 0x18a   :  { %v183_v41 = vpop.f32.mrf.mxu0 }
 0x18b   :  { %193 = vst [vmem:[#allocation7 + $0x8] sm:$0xff] %v189_v40  ;;  %v184_v42 = vadd.f32 %v214_v38, %v183_v41 }
 0x18d   :  { %192 = vst [vmem:[#allocation7] sm:$0xff] %v184_v42 }
 0x18e   :  { %294 = shalt.err (!%p291_p0)
}
 0x18f   :  { %205 = dma.vmem_to_hbm [thread:$0]  %s200_s9, 256, %s382_s5, [#allocation4], %s310_s21, %s310_s21, %s311_s22  }
 0x190   :  { %307 = dma.done.wait [#allocation4], 256  }
 0x191   :  { %308 = vsyncadd [#allocation4], 4294967040 }
 0x192   :  { %209 = vsyncpa [#allocation3], 1 }
 0x193   :  { %210 = vsyncpa [#allocation6], 1 }
 0x194   :  { %211 = vsyncpa [#allocation4], 1 }

</bundles_post_ra>
